<compile_context>
chip_gen: v7x
topology: tpu7x:2x2x1
jax: 0.10.0
libtpu: 0.0.40
codegen_flags: <defaults>
</compile_context>

<pallas_src>
import numpy as np
from functools import partial

import jax
import jax.numpy as jnp
from jax.experimental import pallas as pl
from jax.experimental.pallas import tpu as pltpu


# ----------------------------- small utilities -----------------------------

_ROLL_SIGN = None


def _pltpu_roll_sign():
    """Probe pltpu.roll's direction once (outside jit): +1 if it matches
    jnp.roll semantics (result[j] = x[j - shift]), else -1."""
    global _ROLL_SIGN
    if _ROLL_SIGN is None:
        def k(x_ref, o_ref):
            o_ref[...] = pltpu.roll(x_ref[...], shift=1, axis=1)
        x = jnp.arange(8 * 128, dtype=jnp.float32).reshape(8, 128)
        y = pl.pallas_call(
            k, out_shape=jax.ShapeDtypeStruct((8, 128), jnp.float32))(x)
        _ROLL_SIGN = 1 if bool(jnp.allclose(y, jnp.roll(x, 1, axis=1))) else -1
    return _ROLL_SIGN


def _make_tap_masks(H, W):
    """(9, H*W) f32; mask[k, y*W+x] = 1 iff the tap (oy,ox) reads inside the
    image (k = (oy+1)*3 + (ox+1)).  Replaces the zero-padded scratch."""
    yy, xx = np.meshgrid(np.arange(H), np.arange(W), indexing='ij')
    masks = []
    for oy in (-1, 0, 1):
        for ox in (-1, 0, 1):
            valid = ((yy + oy >= 0) & (yy + oy < H) &
                     (xx + ox >= 0) & (xx + ox < W))
            masks.append(valid.reshape(-1))
    return np.stack(masks).astype(np.float32)


# ----------------------------- Pallas kernel -----------------------------

def _conv3x3_vpu(x, w_ref, mask_ref, *, W, roll_sign):
    """3x3 'same' conv of x (Cin, HW) -> (Cout, HW), entirely in vregs.

    w_ref   : VMEM ref (9, Cin, Cout, 1), tap order k = (oy+1)*3 + (ox+1).
    mask_ref: VMEM ref (9, HW) f32 border masks.
    Per tap: one lane roll (XLU) + mask (VPU); then Cin broadcast-FMAs
    (Cout,1)*(1,HW) accumulated on the VPU.  No MXU, no padded scratch,
    no unaligned stores; accumulator starts from the first term (no zero
    fill)."""
    C, HW = x.shape
    acc = None
    k = 0
    for oy in (-1, 0, 1):
        for ox in (-1, 0, 1):
            off = oy * W + ox
            if off == 0:
                shifted = x                       # center tap: no roll, mask==1
            else:
                shifted = pltpu.roll(x, shift=(-off * roll_sign) % HW, axis=1)
                shifted = shifted * mask_ref[k:k + 1, :]
            for ci in range(C):
                term = w_ref[k, ci] * shifted[ci:ci + 1, :]  # (Cout,1)*(1,HW)
                acc = term if acc is None else acc + term
            k += 1
    return acc


def _fused_p_losses_kernel(scal_ref,                 # SMEM (B, 8) per-batch scalars
                           cond_ref, x_ref,          # VMEM (1, C, HW)
                           wdf_ref, bdf_ref,         # denoise_fn conv weights / bias
                           wdn_ref, emb_ref,         # denoisor conv weights, (bias + noise-level emb)
                           mask_ref, perm_ref,       # (9, HW) tap masks, (HW, HW) one-hot perm
                           xrecon_ref, xstart_ref, sq_ref,   # outputs
                           *, W, roll_sign):
    b = pl.program_id(0)
    fa = scal_ref[b, 0]      # sqrt_alphas_cumprod_prev[matched_state]
    inv_s = scal_ref[b, 1]   # 1 / sqrt(1 - fa^2)
    shift = scal_ref[b, 2]   # sqrt(1 - fa^2) / fa
    cont = scal_ref[b, 3]    # continuous sqrt alpha cumprod
    scont = scal_ref[b, 4]   # sqrt(1 - cont^2)
    c1 = scal_ref[b, 5]      # sqrt_recip_alphas_cumprod[t-1]
    c2 = scal_ref[b, 6]      # sqrt_recipm1_alphas_cumprod[t-1]

    cond = cond_ref[0]       # (C, HW)
    x = x_ref[0]             # (C, HW)

    # x_start0 = denoise_fn(condition)   (3x3 conv + bias)
    x_start0 = _conv3x3_vpu(cond, wdf_ref, mask_ref,
                            W=W, roll_sign=roll_sign) + bdf_ref[...]

    # noise extraction, per-batch mean-centering, x_start shift
    noise = (x - fa * x_start0) * inv_s
    nm = jnp.mean(noise)
    noise = noise - nm
    x_start = x_start0 + nm * shift

    # spatial permutation of the centered noise, in VMEM, via one-hot matmul
    noise_p = jnp.dot(noise, perm_ref[...], preferred_element_type=jnp.float32)

    # q_sample
    x_noisy = cont * x_start + scont * noise_p

    # eps = denoisor(x_noisy, cont)  (3x3 conv + conv bias + noise-level emb)
    eps = _conv3x3_vpu(x_noisy, wdn_ref, mask_ref,
                       W=W, roll_sign=roll_sign) + emb_ref[0]

    # predict_start_from_noise(t-1)  +  per-batch squared-error partial sum
    x_recon = c1 * x_noisy - c2 * eps
    xstart_ref[0] = x_start
    xrecon_ref[0] = x_recon
    d = x_recon - x
    sq_ref[...] = jnp.broadcast_to(jnp.sum(d * d), sq_ref.shape)


# ----------------------------- pallas_call wrapper -----------------------------

def _fused_call(scal, cond_f, x_f, wdf, bdf, wdn, emb, masks, perm,
                *, W, roll_sign):
    B, C, HW = x_f.shape
    smem = pl.BlockSpec(memory_space=pltpu.MemorySpace.SMEM)
    img = pl.BlockSpec((1, C, HW), lambda b: (b, 0, 0))
    wsp = pl.BlockSpec((9, C, C, 1), lambda b: (0, 0, 0, 0))
    bsp = pl.BlockSpec((C, 1), lambda b: (0, 0))
    esp = pl.BlockSpec((1, C, 1), lambda b: (b, 0, 0))
    msp = pl.BlockSpec((9, HW), lambda b: (0, 0))
    # TODO(synk): mark the grid-invariant perm/weight specs
    # pipeline_mode=pl.Buffered(1) once single-buffered pipeline_mode is
    # verified on this jax build.
    psp = pl.BlockSpec((HW, HW), lambda b: (0, 0))
    sqsp = pl.BlockSpec((1, 1, 128), lambda b: (b, 0, 0))

    conv_flops = 2 * 9 * C * C * HW
    flops = B * (2 * conv_flops + 2 * C * HW * HW + 32 * C * HW)
    bytes_accessed = 4 * (4 * B * C * HW + HW * HW + 9 * HW + B * 128
                          + 2 * 9 * C * C + C + B * C + 8 * B)

    return pl.pallas_call(
        partial(_fused_p_losses_kernel, W=W, roll_sign=roll_sign),
        grid=(B,),
        in_specs=[smem, img, img, wsp, bsp, wsp, esp, msp, psp],
        out_specs=(img, img, sqsp),
        out_shape=(jax.ShapeDtypeStruct((B, C, HW), jnp.float32),
                   jax.ShapeDtypeStruct((B, C, HW), jnp.float32),
                   jax.ShapeDtypeStruct((B, 1, 128), jnp.float32)),
        compiler_params=pltpu.CompilerParams(dimension_semantics=("parallel",)),
        cost_estimate=pl.CostEstimate(flops=flops, transcendentals=0,
                                      bytes_accessed=bytes_accessed),
    )(scal, cond_f, x_f, wdf, bdf, wdn, emb, masks, perm)


# ----------------------------- model -----------------------------

class GaussianDiffusionPallas:
    """p_losses / forward of GaussianDiffusion with synthetic 3x3-conv
    denoise_fn / denoisor (the real module takes arbitrary external nets)."""

    def __init__(self, image_size, channels, n_timestep=100,
                 linear_start=1e-4, linear_end=2e-2, key=None):
        # linear beta schedule (same math as set_new_noise_schedule)
        betas = np.linspace(linear_start, linear_end, n_timestep, dtype=np.float64)
        alphas_cumprod = np.cumprod(1.0 - betas, axis=0)
        self.num_timesteps = int(n_timestep)
        self.sqrt_alphas_cumprod_prev = jnp.asarray(
            np.sqrt(np.append(1.0, alphas_cumprod)), jnp.float32)
        self.sqrt_recip_alphas_cumprod = jnp.asarray(
            np.sqrt(1.0 / alphas_cumprod), jnp.float32)
        self.sqrt_recipm1_alphas_cumprod = jnp.asarray(
            np.sqrt(1.0 / alphas_cumprod - 1.0), jnp.float32)

        C = channels
        self.channels = C
        self.image_size = image_size
        k1, k2, k3, k4, k5, k6 = jax.random.split(key, 6)
        # raw parameters (reference layout): 3x3 convs + linear noise-level emb
        self.w_df = 0.1 * jax.random.normal(k1, (3, 3, C, C), jnp.float32)
        self.b_df = 0.1 * jax.random.normal(k2, (C,), jnp.float32)
        self.w_dn = 0.1 * jax.random.normal(k3, (3, 3, C, C), jnp.float32)
        self.b_dn = 0.1 * jax.random.normal(k4, (C,), jnp.float32)
        self.w_t = 0.1 * jax.random.normal(k5, (1, C), jnp.float32)
        self.b_t = 0.1 * jax.random.normal(k6, (C,), jnp.float32)
        # kernel layouts: (9, Cin, Cout, 1) weight columns, (C, 1) bias column
        self.w_df_k = self.w_df.reshape(9, C, C)[..., None]
        self.w_dn_k = self.w_dn.reshape(9, C, C)[..., None]
        self.b_df_k = self.b_df.reshape(C, 1)

        self._roll_sign = _pltpu_roll_sign()
        self._forward_jit = jax.jit(self._p_losses)

    # ------------------------- forward / p_losses -------------------------

    def _p_losses(self, X, cond, matched_state, rng):
        B, C, H, W = X.shape
        HW = H * W
        N = C * HW
        # lane-dense layout: (B, C, H*W) -- a free reshape from NCHW
        x_f = X.reshape(B, C, HW)
        cond_f = cond.reshape(B, C, HW)

        # matched_state == 0 gives fa == 1 (divide-by-zero in the reference
        # module too); clamp to >= 1 on device.
        ms = jnp.maximum(matched_state, 1)
        fa = jnp.take(self.sqrt_alphas_cumprod_prev, ms)            # (B,)
        inv_s = jax.lax.rsqrt(1.0 - fa * fa)                        # 1/sqrt(1-fa^2)
        shift = jnp.sqrt(1.0 - fa * fa) / fa                        # s/fa

        # t ~ randint(1, T+1); continuous sqrt alpha ~ U(prev[t-1], prev[t])
        k_t, k_u, k_p = jax.random.split(rng, 3)
        t = jax.random.randint(k_t, (B,), 1, self.num_timesteps + 1)
        low = jnp.take(self.sqrt_alphas_cumprod_prev, t - 1)
        high = jnp.take(self.sqrt_alphas_cumprod_prev, t)
        u = jax.random.uniform(k_u, (B,), jnp.float32)
        cont = low + u * (high - low)
        scont = jnp.sqrt(1.0 - cont * cont)
        c1 = jnp.take(self.sqrt_recip_alphas_cumprod, t - 1)
        c2 = jnp.take(self.sqrt_recipm1_alphas_cumprod, t - 1)
        scal = jnp.stack([fa, inv_s, shift, cont, scont, c1, c2,
                          jnp.zeros_like(fa)], axis=1)              # (B, 8) SMEM

        # one-hot spatial permutation matrix (same perm for all b, c):
        # P[i, j] = 1 iff rand_idx[j] == i  =>  (noise @ P)[:, j] = noise[:, rand_idx[j]]
        rand_idx = jax.random.permutation(k_p, HW)
        perm = jax.nn.one_hot(rand_idx, HW, dtype=jnp.float32).T

        # noise-level embedding + denoisor conv bias, per batch (tiny (B, C))
        emb = (cont[:, None] @ self.w_t + self.b_t + self.b_dn).reshape(B, C, 1)

        # per-tap border masks for the roll-based 3x3 conv (compile-time const)
        masks = jnp.asarray(_make_tap_masks(H, W))

        x_recon_f, x_start_f, sq = _fused_call(
            scal, cond_f, x_f, self.w_df_k, self.b_df_k, self.w_dn_k,
            emb, masks, perm, W=W, roll_sign=self._roll_sign)

        total_loss = jnp.sum(sq[:, 0, 0]) * (1.0 / (B * N))   # nn.MSELoss() mean
        return dict(total_loss=total_loss,
                    x_recon=x_recon_f.reshape(B, C, H, W),
                    x_start=x_start_f.reshape(B, C, H, W))

    def forward(self, x_in, rng):
        X = jnp.asarray(x_in['X'], jnp.float32)
        cond = jnp.asarray(x_in['condition'], jnp.float32)
        ms = jnp.asarray(x_in['matched_state'], jnp.int32)
        return self._forward_jit(X, cond, ms, rng)


# TODO(synk): TTT branch, optimizer state, and the iterative p_sample_loop /
# DDIM sampling are inference/training-loop machinery outside forward(); not
# implemented.


# ----------------------------- pure-JAX reference (correctness check) --------

def _reference_forward(model, X, cond, matched_state, rng):
    B, C, H, W = X.shape

    def conv3x3(x, w, bias):  # x (B,C,H,W), w (3,3,Cin,Cout), bias (Cout,)
        xp = jnp.pad(x, ((0, 0), (0, 0), (1, 1), (1, 1)))
        o = jnp.zeros((B, w.shape[-1], H, W), jnp.float32)
        for dy in range(3):
            for dx in range(3):
                o = o + jnp.einsum('bihw,io->bohw',
                                   xp[:, :, dy:dy + H, dx:dx + W], w[dy, dx])
        return o + bias.reshape(1, -1, 1, 1)

    ms = jnp.maximum(matched_state, 1)
    fa = jnp.take(model.sqrt_alphas_cumprod_prev, ms)[:, None, None, None]
    k_t, k_u, k_p = jax.random.split(rng, 3)
    t = jax.random.randint(k_t, (B,), 1, model.num_timesteps + 1)
    low = jnp.take(model.sqrt_alphas_cumprod_prev, t - 1)
    high = jnp.take(model.sqrt_alphas_cumprod_prev, t)
    u = jax.random.uniform(k_u, (B,), jnp.float32)
    cont = low + u * (high - low)
    c1 = jnp.take(model.sqrt_recip_alphas_cumprod, t - 1)[:, None, None, None]
    c2 = jnp.take(model.sqrt_recipm1_alphas_cumprod, t - 1)[:, None, None, None]

    x_start0 = conv3x3(cond, model.w_df, model.b_df)
    s = jnp.sqrt(1.0 - fa * fa)
    noise = (X - fa * x_start0) / s
    nm = jnp.mean(noise, axis=(1, 2, 3), keepdims=True)
    noise = noise - nm
    x_start = x_start0 + nm * s / fa

    rand_idx = jax.random.permutation(k_p, H * W)
    noise = jnp.take(noise.reshape(B, C, H * W), rand_idx,
                     axis=2).reshape(B, C, H, W)
    contb = cont[:, None, None, None]
    x_noisy = contb * x_start + jnp.sqrt(1.0 - contb * contb) * noise
    emb = cont[:, None] @ model.w_t + model.b_t + model.b_dn
    eps = conv3x3(x_noisy, model.w_dn,
                  jnp.zeros((C,), jnp.float32)) + emb[:, :, None, None]
    x_recon = c1 * x_noisy - c2 * eps
    total_loss = jnp.mean((x_recon - X) ** 2)
    return dict(total_loss=total_loss, x_recon=x_recon, x_start=x_start)


# ----------------------------- demo -----------------------------

if __name__ == "__main__":
    key = jax.random.PRNGKey(0)
    k_param, k_x, k_cond, k_fwd = jax.random.split(key, 4)

    B, C, H, W = 2, 4, 16, 16
    model = GaussianDiffusionPallas(image_size=H, channels=C, n_timestep=100,
                                    key=k_param)

    X = jax.random.normal(k_x, (B, C, H, W), jnp.float32)
    cond = jax.random.normal(k_cond, (B, C, H, W), jnp.float32)
    matched_state = np.array([60, 90], dtype=np.int32)

    out = model.forward(dict(X=X, condition=cond, matched_state=matched_state),
                        k_fwd)
    jax.block_until_ready(out['total_loss'])
    jax.block_until_ready(out['x_recon'])
    jax.block_until_ready(out['x_start'])

    # correctness check against a pure-JAX reference with identical RNG draws
    ref = _reference_forward(model, X, cond, jnp.asarray(matched_state), k_fwd)
    np.testing.assert_allclose(np.asarray(out['x_start']),
                               np.asarray(ref['x_start']), rtol=2e-2, atol=2e-2)
    np.testing.assert_allclose(np.asarray(out['x_recon']),
                               np.asarray(ref['x_recon']), rtol=2e-2, atol=2e-2)
    np.testing.assert_allclose(float(out['total_loss']),
                               float(ref['total_loss']), rtol=2e-2, atol=2e-2)
    assert np.isfinite(float(out['total_loss']))
    print("KERNEL_OK")
</pallas_src>

<mosaic_0001>
module attributes {stable_mosaic.version = 11 : i64} {
  func.func @k(%arg0: memref<8x128xf32, #tpu.memory_space<vmem>>, %arg1: memref<8x128xf32, #tpu.memory_space<vmem>>) attributes {dimension_semantics = [], scalar_prefetch = 0 : i64, scratch_operands = 0 : i64, tpu.core_type = #tpu.core_type<tc>} {
    %c0 = arith.constant 0 : index
    %c0_0 = arith.constant 0 : index
    %0 = vector.load %arg0[%c0, %c0_0] : memref<8x128xf32, #tpu.memory_space<vmem>>, vector<8x128xf32>
    %c1_i32 = arith.constant 1 : i32
    %1 = tpu.dynamic_rotate %0 by %c1_i32 dim 1 : vector<8x128xf32>, i32 -> vector<8x128xf32>
    %c0_1 = arith.constant 0 : index
    %c0_2 = arith.constant 0 : index
    %2 = vector.load %arg1[%c0_1, %c0_2] : memref<8x128xf32, #tpu.memory_space<vmem>>, vector<8x128xf32>
    tpu.vector_store %arg1[%c0_1, %c0_2], %1 {strides = array<i32>} : memref<8x128xf32, #tpu.memory_space<vmem>>, vector<8x128xf32>,
    return
  }
}

</mosaic_0001>

<bundles_post_ra>
// kernel: tpu_custom_call.1
= control target key start
LH: loop header
LB: loop body
LE: loop exit
PB: predicated region body
PF: predicated region fallthrough
CT: control target
= control target key end

     0   :  { %6 = vsyncpa [#allocation3], 0  ;;  %s128_s0 = inlined_call_operand.hbm [shape: f32[8,128], index: 0, kind: input, shape index: {}]   ;;  %s129_s1 = inlined_call_operand.hbm [shape: f32[8,128], index: 1, kind: output, shape index: {}]  }
   0x1   :  { %7 = vsyncpa [#allocation4], 0  ;;  %s91_s6 = smov [#allocation2]   ;;  %s43_s10 = scalar_lea.hbm %s128_s0, 128 }
   0x2   :  { %s14_s7 = sshll.u32 %s91_s6, 4  ;;  %p44_p0 = scmp.ne.s32.totalorder %s128_s0, %s43_s10  ;;  %s15_s7 = int_to_ptr.vmem [resolvable:$true] %s14_s7 }
   0x3   :  { %p47_p1 = scmp.lt.u32.totalorder %s43_s10, %s128_s0 }
   0x5   :  { %p49_p2 = pnand %p47_p1, %p44_p0 }
   0x7   :  { %52 = shalt.err (!%p49_p2)
}
   0x8   :  { %s53_s15 = scalar_lea.vmem %s15_s7, 128  ;;  %p58_p4 = scmp.lt.s32.totalorder %s15_s7, %s15_s7 }
   0x9   :  { %p54_p3 = scmp.ne.s32.totalorder %s15_s7, %s53_s15  ;;  %p59_p5 = scmp.lt.s32.totalorder %s53_s15, %s53_s15 }
   0xb   :  { %p60_p6 = por %p59_p5, %p58_p4 }
   0xd   :  { %p61_p7 = pnand %p60_p6, %p54_p3 }
   0xf   :  { %64 = shalt.err (!%p61_p7)
}
  0x10   :  { %17 = dma.hbm_to_vmem [thread:$0]  %s128_s0, 128, %s15_s7, [#allocation3]  }
  0x11   :  { %87 = dma.done.wait [#allocation3], 128  }
  0x12   :  { %88 = vsyncadd [#allocation3], 4294967168  ;;  %v21_v0 = vld [vmem:[#allocation2] sm:$0xff]  ;;  %s92_s18 = smov 1   ;;  %s93_s19 = smov [#allocation5]  }
  0x13   :  { %22 = vrot.lane.b32.xlu0 %v21_v0, %s92_s18  ;;  %s31_s20 = sshll.u32 %s93_s19, 4  ;;  %s32_s20 = int_to_ptr.vmem [resolvable:$true] %s31_s20 }
  0x14   :  { %s65_s21 = scalar_lea.vmem %s32_s20, 128  ;;  %p70_p9 = scmp.lt.s32.totalorder %s32_s20, %s32_s20 }
  0x15   :  { %p66_p8 = scmp.ne.s32.totalorder %s32_s20, %s65_s21  ;;  %p71_p10 = scmp.lt.s32.totalorder %s65_s21, %s65_s21 }
  0x17   :  { %p72_p11 = por %p71_p10, %p70_p9 }
  0x19   :  { %p73_p12 = pnand %p72_p11, %p66_p8 }
  0x85   :  { %v23_v1 = vpop.permute.xlu0 %22 }
  0x86   :  { %24 = vst [vmem:[#allocation5] sm:$0xff] %v23_v1 }
  0x87   :  { %76 = shalt.err (!%p73_p12)
}
  0x88   :  { %s77_s0 = scalar_lea.hbm %s129_s1, 128 }
  0x89   :  { %p78_p13 = scmp.ne.s32.totalorder %s129_s1, %s77_s0  ;;  %p81_p0 = scmp.lt.u32.totalorder %s77_s0, %s129_s1 }
  0x8b   :  { %p83_p1 = pnand %p81_p0, %p78_p13 }
  0x8d   :  { %86 = shalt.err (!%p83_p1)
}
  0x8e   :  { %34 = dma.vmem_to_hbm [thread:$0]  %s32_s20, 128, %s129_s1, [#allocation4]  }
  0x8f   :  { %89 = dma.done.wait [#allocation4], 128  }
  0x90   :  { %90 = vsyncadd [#allocation4], 4294967168 }
  0x91   :  { %38 = vsyncpa [#allocation3], 1 }
  0x92   :  { %39 = vsyncpa [#allocation4], 1 }

</bundles_post_ra>
